<compile_context>
chip_gen: v7x
topology: tpu7x:2x2x1
jax: 0.10.0
libtpu: 0.0.40
codegen_flags: <defaults>
</compile_context>

<pallas_src>
import jax
import jax.numpy as jnp
from jax import lax
from jax.experimental import pallas as pl
from jax.experimental.pallas import tpu as pltpu

# ---- problem sizes implied by the module (args.zsd == False -> n = 101) ----
N_OBJ = 101
GLOVE_DIM = 300
ATT_DIM = 5                       # SelfAttention(5, False)
HIDDEN = 32                       # args.hidden_state_sz
ACTION_SPACE = 6                  # args.action_space; lstm_input_sz = 6 + n*5
LSTM_IN = ACTION_SPACE + N_OBJ * ATT_DIM   # 511
H4 = 4 * HIDDEN                   # 128 (all four LSTM gates, lane-dense)
HEAD_W = 8                        # actor(6) + critic(1) + 1 pad lane

_VMEM = pl.BlockSpec(memory_space=pltpu.MemorySpace.VMEM)

# dot_general dimension numbers (2-D, no batch dims)
_NT = (((1,), (1,)), ((), ()))    # contract last dim of both  (q @ k^T style)
_TN = (((0,), (0,)), ((), ()))    # contract first dim of both (lhs transposed)


# --------------------------------------------------------------------------
# Fused kernel
# --------------------------------------------------------------------------
def fused_kernel(obj4t_ref, g_unit_t_ref, target_ref, a_t_ref, wv_ref,
                 ap_ref, hx_ref, cx_ref,
                 w2_ref, w_aph_ref, w_heads_ref, b_heads_ref,
                 actor_ref, critic_ref, hxo_ref, cxo_ref):
    # ---- cosine similarity, lane-dense (1, N) ------------------------------
    # glove rows are pre-normalised AND pre-transposed on the host; the target
    # norm is folded into the matmul LHS via rsqrt (EUP).
    t = target_ref[...]                                             # (1, 300)
    inv_t = lax.rsqrt(jnp.maximum(jnp.sum(t * t, axis=-1, keepdims=True), 1e-16))
    simT = jnp.dot(t * inv_t, g_unit_t_ref[...],
                   preferred_element_type=jnp.float32)              # (1, N)

    # ---- transposed objstate: one sublane concat -> xT = (5, N) ------------
    xT = jnp.concatenate([obj4t_ref[...], simT], axis=0)            # (5, N)

    # ---- self-attention (A = Wq^T @ Wk folded; everything stays (5, N)) ----
    xaT = jnp.dot(a_t_ref[...], xT, preferred_element_type=jnp.float32)  # (5,N) = (x A)^T
    vT = jnp.dot(wv_ref[...], xT, preferred_element_type=jnp.float32)    # (5,N) = V^T
    # append a ones-row so the V contraction also produces the softmax sums
    vT_ext = jnp.concatenate([vT, jnp.ones((1, N_OBJ), jnp.float32)], axis=0)  # (6,N)

    # scores alpha[n, m] = sum_a xaT[a, n] * xT[a, m]
    alpha = lax.dot_general(xaT, xT, _TN,
                            preferred_element_type=jnp.float32)     # (N, N)
    alpha = alpha - jnp.max(alpha, axis=-1, keepdims=True)          # softmax(dim=2)
    p = jnp.exp(alpha)                                              # unnormalised

    # attT_ext[j, n] = sum_m vT_ext[j, m] * p[n, m]
    #   rows 0..4 -> unnormalised attention output (transposed)
    #   row  5    -> per-query softmax denominators
    attT_ext = lax.dot_general(vT_ext, p, _NT,
                               preferred_element_type=jnp.float32)  # (6, N)
    inv_l = pl.reciprocal(attT_ext[5:6, :], approx=True)            # (1, N)
    attT = attT_ext[0:5, :] * inv_l                                 # (5, N)

    # ---- LSTMCell: one fused gate matmul + diagonal-block sum --------------
    # W2[i, j*4H + h] = w_ih[h, 5*i + j]  (packed on the host)
    g_all = jnp.dot(attT, w2_ref[...], preferred_element_type=jnp.float32)  # (5, 5*4H)
    gates = (g_all[0:1, 0 * H4:1 * H4]
             + g_all[1:2, 1 * H4:2 * H4]
             + g_all[2:3, 2 * H4:3 * H4]
             + g_all[3:4, 3 * H4:4 * H4]
             + g_all[4:5, 4 * H4:5 * H4])                           # (1, 4H)

    # action_probs and hx share one stacked weight (38, 4H)
    aph = jnp.concatenate([ap_ref[...], hx_ref[...]], axis=1)       # (1, 38)
    gates = gates + jnp.dot(aph, w_aph_ref[...],
                            preferred_element_type=jnp.float32)     # (1, 4H)
    # lstm.bias_ih / bias_hh are zero-filled in the reference __init__ -> omitted.

    H = HIDDEN                                                      # PyTorch order i,f,g,o
    i_g = jax.nn.sigmoid(gates[:, 0:H])
    f_g = jax.nn.sigmoid(gates[:, H:2 * H])
    g_g = jnp.tanh(gates[:, 2 * H:3 * H])
    o_g = jax.nn.sigmoid(gates[:, 3 * H:4 * H])

    c_new = f_g * cx_ref[...] + i_g * g_g
    h_new = o_g * jnp.tanh(c_new)

    # ---- actor + critic in ONE matmul ---------------------------------------
    heads = jnp.dot(h_new, w_heads_ref[...],
                    preferred_element_type=jnp.float32) + b_heads_ref[...]  # (1, 8)
    actor_ref[...] = heads[:, 0:ACTION_SPACE]
    critic_ref[...] = heads[:, ACTION_SPACE:ACTION_SPACE + 1]
    hxo_ref[...] = h_new
    cxo_ref[...] = c_new


# --------------------------------------------------------------------------
# One-time host-side parameter preparation (hoisted out of the per-step path)
# --------------------------------------------------------------------------
def prepare_params(params, all_glove):
    eps = 1e-8
    g_norm = jnp.maximum(jnp.linalg.norm(all_glove, axis=-1, keepdims=True), eps)
    g_unit_t = (all_glove / g_norm).T                           # (300, N), lane-dense

    # alpha = x (Wq^T Wk) x^T ; we need A^T for the transposed layout
    a_t = params['wk'].T @ params['wq']                         # (5, 5) = A^T

    w_ih = params['w_ih']                                       # (4H, 511)
    # W2[i, j*4H + h] = w_ih[h, 5*i + j]
    w_att = w_ih[:, :N_OBJ * ATT_DIM].reshape(H4, N_OBJ, ATT_DIM)        # (h, i, j)
    w2 = jnp.transpose(w_att, (1, 2, 0)).reshape(N_OBJ, ATT_DIM * H4)    # (101, 640)

    # stacked [action_probs ; hx] weight
    w_aph = jnp.concatenate([w_ih[:, N_OBJ * ATT_DIM:].T,       # (6, 4H)
                             params['w_hh'].T], axis=0)         # (32, 4H) -> (38, 4H)

    # merged actor/critic head, padded to 8 lanes
    w_heads = jnp.concatenate([params['w_actor'].T,             # (H, 6)
                               params['w_critic'].T,            # (H, 1)
                               jnp.zeros((HIDDEN, 1), jnp.float32)], axis=1)  # (H, 8)
    b_heads = jnp.concatenate([params['b_actor'], params['b_critic'],
                               jnp.zeros((1, 1), jnp.float32)], axis=1)       # (1, 8)

    return {
        'g_unit_t': g_unit_t,
        'a_t': a_t,
        'wv': params['wv'],            # (out,in): used as-is -> V^T directly
        'w2': w2,
        'w_aph': w_aph,
        'w_heads': w_heads,
        'b_heads': b_heads,
    }


# --------------------------------------------------------------------------
# Forward: one fused pallas_call, no XLA glue between attention and LSTM
# --------------------------------------------------------------------------
@jax.jit
def selfattention_test_forward(prep, objstate4, target, action_probs, hx, cx):
    obj4t = objstate4.T                                          # (4, N), lane-dense
    return pl.pallas_call(
        fused_kernel,
        out_shape=(
            jax.ShapeDtypeStruct((1, ACTION_SPACE), jnp.float32),  # actor logits
            jax.ShapeDtypeStruct((1, 1), jnp.float32),             # critic value
            jax.ShapeDtypeStruct((1, HIDDEN), jnp.float32),        # hx
            jax.ShapeDtypeStruct((1, HIDDEN), jnp.float32),        # cx
        ),
        in_specs=[_VMEM] * 12,
        out_specs=(_VMEM, _VMEM, _VMEM, _VMEM),
        input_output_aliases={6: 2, 7: 3},     # hx -> hx_out, cx -> cx_out
    )(obj4t, prep['g_unit_t'], target, prep['a_t'], prep['wv'],
      action_probs, hx, cx,
      prep['w2'], prep['w_aph'], prep['w_heads'], prep['b_heads'])


# --------------------------------------------------------------------------
# Pure-JAX reference (un-fused, un-folded weights) for the sanity check
# --------------------------------------------------------------------------
def reference_forward(params, objstate4, all_glove, target, action_probs, hx, cx):
    eps = 1e-8
    g_norm = jnp.maximum(jnp.linalg.norm(all_glove, axis=-1, keepdims=True), eps)
    t_norm = jnp.maximum(jnp.linalg.norm(target, axis=-1, keepdims=True), eps)
    sim = jnp.sum(all_glove * target, axis=-1, keepdims=True) / (g_norm * t_norm)
    xs = jnp.concatenate([objstate4, sim], axis=-1)
    q = xs @ params['wq'].T
    k = xs @ params['wk'].T
    v = xs @ params['wv'].T
    alpha = jax.nn.softmax(q @ k.T, axis=-1)
    att = alpha @ v
    x = jnp.concatenate([att.reshape(1, -1), action_probs], axis=1)
    gates = x @ params['w_ih'].T + hx @ params['w_hh'].T
    H = HIDDEN
    i_g = jax.nn.sigmoid(gates[:, 0:H])
    f_g = jax.nn.sigmoid(gates[:, H:2 * H])
    g_g = jnp.tanh(gates[:, 2 * H:3 * H])
    o_g = jax.nn.sigmoid(gates[:, 3 * H:4 * H])
    c_new = f_g * cx + i_g * g_g
    h_new = o_g * jnp.tanh(c_new)
    actor = h_new @ params['w_actor'].T + params['b_actor']
    critic = h_new @ params['w_critic'].T + params['b_critic']
    return actor, critic, h_new, c_new


if __name__ == "__main__":
    key = jax.random.PRNGKey(0)
    keys = jax.random.split(key, 12)

    # Deterministic parameter init (shapes from the module's __init__).
    params = {
        'wq': 0.3 * jax.random.normal(keys[0], (ATT_DIM, ATT_DIM), jnp.float32),
        'wk': 0.3 * jax.random.normal(keys[1], (ATT_DIM, ATT_DIM), jnp.float32),
        'wv': 0.3 * jax.random.normal(keys[2], (ATT_DIM, ATT_DIM), jnp.float32),
        'w_ih': 0.05 * jax.random.normal(keys[3], (4 * HIDDEN, LSTM_IN), jnp.float32),
        'w_hh': 0.05 * jax.random.normal(keys[4], (4 * HIDDEN, HIDDEN), jnp.float32),
        'w_actor': 0.01 * jax.random.normal(keys[5], (ACTION_SPACE, HIDDEN), jnp.float32),
        'b_actor': jnp.zeros((1, ACTION_SPACE), jnp.float32),   # filled with 0 in __init__
        'w_critic': 1.0 * jax.random.normal(keys[6], (1, HIDDEN), jnp.float32),
        'b_critic': jnp.zeros((1, 1), jnp.float32),             # filled with 0 in __init__
    }

    # Deterministic synthetic inputs (stand-ins for model_input fields).
    objstate4 = jax.random.uniform(keys[7], (N_OBJ, 4), jnp.float32)      # detection feats
    all_glove = jax.random.normal(keys[8], (N_OBJ, GLOVE_DIM), jnp.float32)
    target = jax.random.normal(keys[9], (1, GLOVE_DIM), jnp.float32)      # target glove
    action_probs = jax.nn.softmax(
        jax.random.normal(keys[10], (1, ACTION_SPACE), jnp.float32), axis=-1)
    hx = 0.1 * jax.random.normal(keys[11], (1, HIDDEN), jnp.float32)
    cx = jnp.zeros((1, HIDDEN), jnp.float32)

    # one-time weight folding / pre-transposition (hoisted out of the step path)
    prep = prepare_params(params, all_glove)

    actor, critic, hx_n, cx_n = selfattention_test_forward(
        prep, objstate4, target, action_probs, hx, cx)
    jax.block_until_ready((actor, critic, hx_n, cx_n))

    # sanity check vs pure-JAX reference
    ra, rc, rh, rcx = reference_forward(
        params, objstate4, all_glove, target, action_probs, hx, cx)
    assert actor.shape == (1, ACTION_SPACE) and critic.shape == (1, 1)
    assert hx_n.shape == (1, HIDDEN) and cx_n.shape == (1, HIDDEN)
    for a, b in ((actor, ra), (critic, rc), (hx_n, rh), (cx_n, rcx)):
        assert jnp.all(jnp.isfinite(a))
        assert jnp.allclose(a, b, rtol=2e-2, atol=2e-2)

    print("KERNEL_OK")
</pallas_src>

<mosaic_0001>
module attributes {stable_mosaic.version = 11 : i64} {
  func.func @fused_kernel(%arg0: memref<4x101xf32, #tpu.memory_space<vmem>>, %arg1: memref<300x101xf32, #tpu.memory_space<vmem>>, %arg2: memref<1x300xf32, #tpu.memory_space<vmem>>, %arg3: memref<5x5xf32, #tpu.memory_space<vmem>>, %arg4: memref<5x5xf32, #tpu.memory_space<vmem>>, %arg5: memref<1x6xf32, #tpu.memory_space<vmem>>, %arg6: memref<1x32xf32, #tpu.memory_space<vmem>>, %arg7: memref<1x32xf32, #tpu.memory_space<vmem>>, %arg8: memref<101x640xf32, #tpu.memory_space<vmem>>, %arg9: memref<38x128xf32, #tpu.memory_space<vmem>>, %arg10: memref<32x8xf32, #tpu.memory_space<vmem>>, %arg11: memref<1x8xf32, #tpu.memory_space<vmem>>, %arg12: memref<1x6xf32, #tpu.memory_space<vmem>>, %arg13: memref<1x1xf32, #tpu.memory_space<vmem>>, %arg14: memref<1x32xf32, #tpu.memory_space<vmem>>, %arg15: memref<1x32xf32, #tpu.memory_space<vmem>>) attributes {dimension_semantics = [], scalar_prefetch = 0 : i64, scratch_operands = 0 : i64, tpu.core_type = #tpu.core_type<tc>} {
    %c0 = arith.constant 0 : index
    %c0_0 = arith.constant 0 : index
    %0 = vector.load %arg2[%c0, %c0_0] : memref<1x300xf32, #tpu.memory_space<vmem>>, vector<1x300xf32>
    %1 = arith.mulf %0, %0 : vector<1x300xf32>
    %cst = arith.constant dense<0.000000e+00> : vector<1xf32>
    %2 = vector.multi_reduction <add>, %1, %cst [1] : vector<1x300xf32> to vector<1xf32>
    %3 = vector.shape_cast %2 : vector<1xf32> to vector<1x1xf32>
    %cst_1 = arith.constant 1.000000e-16 : f32
    %4 = vector.broadcast %cst_1 : f32 to vector<1x1xf32>
    %5 = arith.maximumf %3, %4 : vector<1x1xf32>
    %6 = math.rsqrt %5 : vector<1x1xf32>
    %7 = vector.broadcast %6 : vector<1x1xf32> to vector<1x300xf32>
    %8 = arith.mulf %0, %7 : vector<1x300xf32>
    %c0_2 = arith.constant 0 : index
    %c0_3 = arith.constant 0 : index
    %9 = vector.load %arg1[%c0_2, %c0_3] : memref<300x101xf32, #tpu.memory_space<vmem>>, vector<300x101xf32>
    %cst_4 = arith.constant dense<0.000000e+00> : vector<1x101xf32>
    %10 = tpu.matmul %8, %9, %cst_4 {dimension_numbers = #tpu.dot_dimension_numbers<[1], [0], [0], [1], [0, 0, 1, 1], [], []>} : vector<1x300xf32>, vector<300x101xf32>, vector<1x101xf32> -> vector<1x101xf32>
    %c0_5 = arith.constant 0 : index
    %c0_6 = arith.constant 0 : index
    %11 = vector.load %arg0[%c0_5, %c0_6] : memref<4x101xf32, #tpu.memory_space<vmem>>, vector<4x101xf32>
    %12 = tpu.concatenate %11, %10 in 0 : vector<4x101xf32>, vector<1x101xf32> -> vector<5x101xf32>
    %c0_7 = arith.constant 0 : index
    %c0_8 = arith.constant 0 : index
    %13 = vector.load %arg3[%c0_7, %c0_8] : memref<5x5xf32, #tpu.memory_space<vmem>>, vector<5x5xf32>
    %cst_9 = arith.constant dense<0.000000e+00> : vector<5x101xf32>
    %14 = tpu.matmul %13, %12, %cst_9 {dimension_numbers = #tpu.dot_dimension_numbers<[1], [0], [0], [1], [0, 0, 1, 1], [], []>} : vector<5x5xf32>, vector<5x101xf32>, vector<5x101xf32> -> vector<5x101xf32>
    %c0_10 = arith.constant 0 : index
    %c0_11 = arith.constant 0 : index
    %15 = vector.load %arg4[%c0_10, %c0_11] : memref<5x5xf32, #tpu.memory_space<vmem>>, vector<5x5xf32>
    %cst_12 = arith.constant dense<0.000000e+00> : vector<5x101xf32>
    %16 = tpu.matmul %15, %12, %cst_12 {dimension_numbers = #tpu.dot_dimension_numbers<[1], [0], [0], [1], [0, 0, 1, 1], [], []>} : vector<5x5xf32>, vector<5x101xf32>, vector<5x101xf32> -> vector<5x101xf32>
    %cst_13 = arith.constant 1.000000e+00 : f32
    %17 = vector.broadcast %cst_13 : f32 to vector<1x101xf32>
    %18 = tpu.concatenate %16, %17 in 0 : vector<5x101xf32>, vector<1x101xf32> -> vector<6x101xf32>
    %cst_14 = arith.constant dense<0.000000e+00> : vector<101x101xf32>
    %19 = tpu.matmul %14, %12, %cst_14 {dimension_numbers = #tpu.dot_dimension_numbers<[0], [0], [1], [1], [0, 1, 1, 1], [], []>} : vector<5x101xf32>, vector<5x101xf32>, vector<101x101xf32> -> vector<101x101xf32>
    %cst_15 = arith.constant dense<0xFF800000> : vector<101xf32>
    %20 = vector.multi_reduction <maximumf>, %19, %cst_15 [1] : vector<101x101xf32> to vector<101xf32>
    %21 = vector.shape_cast %20 : vector<101xf32> to vector<101x1xf32>
    %22 = vector.broadcast %21 : vector<101x1xf32> to vector<101x101xf32>
    %23 = arith.subf %19, %22 : vector<101x101xf32>
    %24 = math.exp %23 : vector<101x101xf32>
    %cst_16 = arith.constant dense<0.000000e+00> : vector<6x101xf32>
    %25 = tpu.matmul %18, %24, %cst_16 {dimension_numbers = #tpu.dot_dimension_numbers<[1], [1], [0], [0], [0, 0, 1, 0], [], []>} : vector<6x101xf32>, vector<101x101xf32>, vector<6x101xf32> -> vector<6x101xf32>
    %26 = vector.extract_strided_slice %25 {offsets = [5, 0], sizes = [1, 101], strides = [1, 1]} : vector<6x101xf32> to vector<1x101xf32>
    %27 = tpu.reciprocal %26 {approx = true} : vector<1x101xf32> -> vector<1x101xf32>
    %28 = vector.extract_strided_slice %25 {offsets = [0, 0], sizes = [5, 101], strides = [1, 1]} : vector<6x101xf32> to vector<5x101xf32>
    %29 = vector.broadcast %27 : vector<1x101xf32> to vector<5x101xf32>
    %30 = arith.mulf %28, %29 : vector<5x101xf32>
    %c0_17 = arith.constant 0 : index
    %c0_18 = arith.constant 0 : index
    %31 = vector.load %arg8[%c0_17, %c0_18] : memref<101x640xf32, #tpu.memory_space<vmem>>, vector<101x640xf32>
    %cst_19 = arith.constant dense<0.000000e+00> : vector<5x640xf32>
    %32 = tpu.matmul %30, %31, %cst_19 {dimension_numbers = #tpu.dot_dimension_numbers<[1], [0], [0], [1], [0, 0, 1, 1], [], []>} : vector<5x101xf32>, vector<101x640xf32>, vector<5x640xf32> -> vector<5x640xf32>
    %33 = vector.extract_strided_slice %32 {offsets = [0, 0], sizes = [1, 128], strides = [1, 1]} : vector<5x640xf32> to vector<1x128xf32>
    %34 = vector.extract_strided_slice %32 {offsets = [1, 128], sizes = [1, 128], strides = [1, 1]} : vector<5x640xf32> to vector<1x128xf32>
    %35 = arith.addf %33, %34 : vector<1x128xf32>
    %36 = vector.extract_strided_slice %32 {offsets = [2, 256], sizes = [1, 128], strides = [1, 1]} : vector<5x640xf32> to vector<1x128xf32>
    %37 = arith.addf %35, %36 : vector<1x128xf32>
    %38 = vector.extract_strided_slice %32 {offsets = [3, 384], sizes = [1, 128], strides = [1, 1]} : vector<5x640xf32> to vector<1x128xf32>
    %39 = arith.addf %37, %38 : vector<1x128xf32>
    %40 = vector.extract_strided_slice %32 {offsets = [4, 512], sizes = [1, 128], strides = [1, 1]} : vector<5x640xf32> to vector<1x128xf32>
    %41 = arith.addf %39, %40 : vector<1x128xf32>
    %c0_20 = arith.constant 0 : index
    %c0_21 = arith.constant 0 : index
    %42 = vector.load %arg5[%c0_20, %c0_21] : memref<1x6xf32, #tpu.memory_space<vmem>>, vector<1x6xf32>
    %c0_22 = arith.constant 0 : index
    %c0_23 = arith.constant 0 : index
    %43 = vector.load %arg6[%c0_22, %c0_23] : memref<1x32xf32, #tpu.memory_space<vmem>>, vector<1x32xf32>
    %44 = tpu.concatenate %42, %43 in 1 : vector<1x6xf32>, vector<1x32xf32> -> vector<1x38xf32>
    %c0_24 = arith.constant 0 : index
    %c0_25 = arith.constant 0 : index
    %45 = vector.load %arg9[%c0_24, %c0_25] : memref<38x128xf32, #tpu.memory_space<vmem>>, vector<38x128xf32>
    %cst_26 = arith.constant dense<0.000000e+00> : vector<1x128xf32>
    %46 = tpu.matmul %44, %45, %cst_26 {dimension_numbers = #tpu.dot_dimension_numbers<[1], [0], [0], [1], [0, 0, 1, 1], [], []>} : vector<1x38xf32>, vector<38x128xf32>, vector<1x128xf32> -> vector<1x128xf32>
    %47 = arith.addf %41, %46 : vector<1x128xf32>
    %48 = vector.extract_strided_slice %47 {offsets = [0, 0], sizes = [1, 32], strides = [1, 1]} : vector<1x128xf32> to vector<1x32xf32>
    %49 = arith.negf %48 : vector<1x32xf32>
    %50 = math.exp %49 : vector<1x32xf32>
    %cst_27 = arith.constant 1.000000e+00 : f32
    %51 = vector.broadcast %cst_27 : f32 to vector<1x32xf32>
    %52 = arith.addf %51, %50 : vector<1x32xf32>
    %53 = arith.divf %51, %52 : vector<1x32xf32>
    %54 = vector.extract_strided_slice %47 {offsets = [0, 32], sizes = [1, 32], strides = [1, 1]} : vector<1x128xf32> to vector<1x32xf32>
    %55 = arith.negf %54 : vector<1x32xf32>
    %56 = math.exp %55 : vector<1x32xf32>
    %cst_28 = arith.constant 1.000000e+00 : f32
    %57 = vector.broadcast %cst_28 : f32 to vector<1x32xf32>
    %58 = arith.addf %57, %56 : vector<1x32xf32>
    %59 = arith.divf %57, %58 : vector<1x32xf32>
    %60 = vector.extract_strided_slice %47 {offsets = [0, 64], sizes = [1, 32], strides = [1, 1]} : vector<1x128xf32> to vector<1x32xf32>
    %61 = math.tanh %60 : vector<1x32xf32>
    %62 = vector.extract_strided_slice %47 {offsets = [0, 96], sizes = [1, 32], strides = [1, 1]} : vector<1x128xf32> to vector<1x32xf32>
    %63 = arith.negf %62 : vector<1x32xf32>
    %64 = math.exp %63 : vector<1x32xf32>
    %cst_29 = arith.constant 1.000000e+00 : f32
    %65 = vector.broadcast %cst_29 : f32 to vector<1x32xf32>
    %66 = arith.addf %65, %64 : vector<1x32xf32>
    %67 = arith.divf %65, %66 : vector<1x32xf32>
    %c0_30 = arith.constant 0 : index
    %c0_31 = arith.constant 0 : index
    %68 = vector.load %arg7[%c0_30, %c0_31] : memref<1x32xf32, #tpu.memory_space<vmem>>, vector<1x32xf32>
    %69 = arith.mulf %59, %68 : vector<1x32xf32>
    %70 = arith.mulf %53, %61 : vector<1x32xf32>
    %71 = arith.addf %69, %70 : vector<1x32xf32>
    %72 = math.tanh %71 : vector<1x32xf32>
    %73 = arith.mulf %67, %72 : vector<1x32xf32>
    %c0_32 = arith.constant 0 : index
    %c0_33 = arith.constant 0 : index
    %74 = vector.load %arg10[%c0_32, %c0_33] : memref<32x8xf32, #tpu.memory_space<vmem>>, vector<32x8xf32>
    %cst_34 = arith.constant dense<0.000000e+00> : vector<1x8xf32>
    %75 = tpu.matmul %73, %74, %cst_34 {dimension_numbers = #tpu.dot_dimension_numbers<[1], [0], [0], [1], [0, 0, 1, 1], [], []>} : vector<1x32xf32>, vector<32x8xf32>, vector<1x8xf32> -> vector<1x8xf32>
    %c0_35 = arith.constant 0 : index
    %c0_36 = arith.constant 0 : index
    %76 = vector.load %arg11[%c0_35, %c0_36] : memref<1x8xf32, #tpu.memory_space<vmem>>, vector<1x8xf32>
    %77 = arith.addf %75, %76 : vector<1x8xf32>
    %78 = vector.extract_strided_slice %77 {offsets = [0, 0], sizes = [1, 6], strides = [1, 1]} : vector<1x8xf32> to vector<1x6xf32>
    %c0_37 = arith.constant 0 : index
    %c0_38 = arith.constant 0 : index
    %79 = vector.load %arg12[%c0_37, %c0_38] : memref<1x6xf32, #tpu.memory_space<vmem>>, vector<1x6xf32>
    tpu.vector_store %arg12[%c0_37, %c0_38], %78 {strides = array<i32>} : memref<1x6xf32, #tpu.memory_space<vmem>>, vector<1x6xf32>,
    %80 = vector.extract_strided_slice %77 {offsets = [0, 6], sizes = [1, 1], strides = [1, 1]} : vector<1x8xf32> to vector<1x1xf32>
    %c0_39 = arith.constant 0 : index
    %c0_40 = arith.constant 0 : index
    %81 = vector.load %arg13[%c0_39, %c0_40] : memref<1x1xf32, #tpu.memory_space<vmem>>, vector<1x1xf32>
    tpu.vector_store %arg13[%c0_39, %c0_40], %80 {strides = array<i32>} : memref<1x1xf32, #tpu.memory_space<vmem>>, vector<1x1xf32>,
    %c0_41 = arith.constant 0 : index
    %c0_42 = arith.constant 0 : index
    %82 = vector.load %arg14[%c0_41, %c0_42] : memref<1x32xf32, #tpu.memory_space<vmem>>, vector<1x32xf32>
    tpu.vector_store %arg14[%c0_41, %c0_42], %73 {strides = array<i32>} : memref<1x32xf32, #tpu.memory_space<vmem>>, vector<1x32xf32>,
    %c0_43 = arith.constant 0 : index
    %c0_44 = arith.constant 0 : index
    %83 = vector.load %arg15[%c0_43, %c0_44] : memref<1x32xf32, #tpu.memory_space<vmem>>, vector<1x32xf32>
    tpu.vector_store %arg15[%c0_43, %c0_44], %71 {strides = array<i32>} : memref<1x32xf32, #tpu.memory_space<vmem>>, vector<1x32xf32>,
    return
  }
}

</mosaic_0001>

<bundles_post_ra>
// kernel: selfattention_test_forward.1
= control target key start
LH: loop header
LB: loop body
LE: loop exit
PB: predicated region body
PF: predicated region fallthrough
CT: control target
= control target key end

     0   :  { %21 = vsyncpa [#allocation3], 0  ;;  %s2658_s0 = inlined_call_operand.vmem [shape: f32[4,101], index: 0, kind: input, shape index: {}]   ;;  %s2659_s1 = inlined_call_operand.hbm [shape: f32[300,101], index: 1, kind: input, shape index: {}]   ;;  %s2660_s2 = inlined_call_operand.vmem [shape: f32[1,300], index: 2, kind: input, shape index: {}]   ;;  %s2661_s3 = inlined_call_operand.vmem [shape: f32[5,5], index: 3, kind: input, shape index: {}]   ;;  %s2662_s4 = inlined_call_operand.vmem [shape: f32[5,5], index: 4, kind: input, shape index: {}]   ;;  %s2663_s5 = inlined_call_operand.vmem [shape: f32[1,6], index: 5, kind: input, shape index: {}]   ;;  %s2664_s6 = inlined_call_operand.hbm [shape: f32[1,32], index: 6, kind: input, shape index: {}, may-alias: {6,14}]   ;;  %s2665_s7 = inlined_call_operand.hbm [shape: f32[1,32], index: 7, kind: input, shape index: {}, may-alias: {7,15}]   ;;  %s2666_s8 = inlined_call_operand.hbm [shape: f32[101,640], index: 8, kind: input, shape index: {}]   ;;  %s2667_s9 = inlined_call_operand.vmem [shape: f32[38,128], index: 9, kind: input, shape index: {}]   ;;  %s2668_s10 = inlined_call_operand.vmem [shape: f32[32,8], index: 10, kind: input, shape index: {}]   ;;  %s2669_s11 = inlined_call_operand.vmem [shape: f32[1,8], index: 11, kind: input, shape index: {}]   ;;  %s2670_s12 = inlined_call_operand.hbm [shape: f32[1,6], index: 12, kind: output, shape index: {0}]   ;;  %s2671_s13 = inlined_call_operand.hbm [shape: f32[1,1], index: 13, kind: output, shape index: {1}]   ;;  %s2672_s14 = inlined_call_operand.hbm [shape: f32[1,32], index: 14, kind: output, shape index: {2}, may-alias: {6,14}]   ;;  %s2673_s15 = inlined_call_operand.hbm [shape: f32[1,32], index: 15, kind: output, shape index: {3}, may-alias: {7,15}]  }
   0x1   :  { %22 = vsyncpa [#allocation6], 0 }
   0x2   :  { %23 = vsyncpa [#allocation9], 0 }
   0x3   :  { %24 = vsyncpa [#allocation4], 0 }
   0x4   :  { %25 = vsyncpa [#allocation12], 0 }
   0x5   :  { %26 = vsyncpa [#allocation15], 0  ;;  %s2174_s18 = smov [#allocation5]   ;;  %s2175_s20 = smov [#allocation2]  }
   0x6   :  { %s55_s19 = sshll.u32 %s2174_s18, 4  ;;  %s34_s21 = sshll.u32 %s2175_s20, 4  ;;  %s56_s19 = int_to_ptr.vmem [resolvable:$true] %s55_s19  ;;  %s2275_s21 = int_to_ptr.vmem [resolvable:$true] %s34_s21 }
   0x7   :  { %s1986_s24 = scalar_lea.hbm %s2664_s6, 16 }
   0x8   :  { %p1987_p0 = scmp.ne.s32.totalorder %s2664_s6, %s1986_s24  ;;  %p1990_p1 = scmp.lt.u32.totalorder %s1986_s24, %s2664_s6 }
   0xa   :  { %p1992_p2 = pnand %p1990_p1, %p1987_p0 }
   0xc   :  { %1995 = shalt.err (!%p1992_p2)
}
   0xd   :  { %s1996_s29 = scalar_lea.vmem %s56_s19, 16  ;;  %s2000_s30 = scalar_lea.vmem %s56_s19, 32 }
   0xe   :  { %p1997_p3 = scmp.ne.s32.totalorder %s56_s19, %s1996_s29  ;;  %p2001_p4 = scmp.lt.s32.totalorder %s56_s19, %s56_s19 }
   0xf   :  { %p2002_p5 = scmp.lt.s32.totalorder %s2000_s30, %s1996_s29 }
  0x11   :  { %p2003_p6 = por %p2002_p5, %p2001_p4 }
  0x13   :  { %p2004_p7 = pnand %p2003_p6, %p1997_p3 }
  0x15   :  { %2007 = shalt.err (!%p2004_p7)
}
  0x16   :  { %58 = dma.hbm_to_vmem [thread:$0]  %s2664_s6, 16, %s56_s19, [#allocation6]  }
  0x17   :  { %s2008_s22 = scalar_lea.hbm %s2659_s1, 4864 }
  0x18   :  { %p2009_p8 = scmp.ne.s32.totalorder %s2659_s1, %s2008_s22  ;;  %p2012_p9 = scmp.lt.u32.totalorder %s2008_s22, %s2659_s1 }
  0x1a   :  { %p2014_p10 = pnand %p2012_p9, %p2009_p8 }
  0x1c   :  { %2017 = shalt.err (!%p2014_p10)
}
  0x1d   :  { %s2018_s27 = scalar_lea.vmem %s2275_s21, 4864  ;;  %p2023_p12 = scmp.lt.s32.totalorder %s2275_s21, %s2275_s21 }
  0x1e   :  { %p2019_p11 = scmp.ne.s32.totalorder %s2275_s21, %s2018_s27  ;;  %p2024_p13 = scmp.lt.s32.totalorder %s2018_s27, %s2018_s27 }
  0x20   :  { %p2025_p0 = por %p2024_p13, %p2023_p12 }
  0x22   :  { %p2026_p1 = pnand %p2025_p0, %p2019_p11 }
  0x24   :  { %2029 = shalt.err (!%p2026_p1)
}
  0x25   :  { %s2176_s6 = smov 128   ;;  %s2177_s19 = smov 8  }
  0x26   :  { %40 = dma.hbm_to_vmem [thread:$0]  %s2659_s1, 4864, %s2275_s21, [#allocation3], %s2176_s6, %s2176_s6, %s2177_s19  }
  0x27   :  { %s2178_s30 = smov [#allocation7]   ;;  %s2179_s17 = smov [#allocation8]  }
  0x28   :  { %s65_s16 = sshll.u32 %s2178_s30, 4  ;;  %s74_s18 = sshll.u32 %s2179_s17, 4  ;;  %s66_s16 = int_to_ptr.vmem [resolvable:$true] %s65_s16  ;;  %s2306_s18 = int_to_ptr.vmem [resolvable:$true] %s74_s18 }
  0x29   :  { %s2030_s23 = scalar_lea.hbm %s2665_s7, 16 }
  0x2a   :  { %p2031_p2 = scmp.ne.s32.totalorder %s2665_s7, %s2030_s23  ;;  %p2034_p3 = scmp.lt.u32.totalorder %s2030_s23, %s2665_s7 }
  0x2c   :  { %p2036_p4 = pnand %p2034_p3, %p2031_p2 }
  0x2e   :  { %2039 = shalt.err (!%p2036_p4)
}
  0x2f   :  { %s2040_s1 = scalar_lea.vmem %s66_s16, 16  ;;  %s2044_s21 = scalar_lea.vmem %s66_s16, 32 }
  0x30   :  { %p2041_p5 = scmp.ne.s32.totalorder %s66_s16, %s2040_s1  ;;  %p2045_p6 = scmp.lt.s32.totalorder %s66_s16, %s66_s16 }
  0x31   :  { %p2046_p7 = scmp.lt.s32.totalorder %s2044_s21, %s2040_s1 }
  0x33   :  { %p2047_p8 = por %p2046_p7, %p2045_p6 }
  0x35   :  { %p2048_p9 = pnand %p2047_p8, %p2041_p5 }
  0x37   :  { %2051 = shalt.err (!%p2048_p9)
}
  0x38   :  { %68 = dma.hbm_to_vmem [thread:$0]  %s2665_s7, 16, %s66_s16, [#allocation6]  }
  0x39   :  { %s2052_s30 = scalar_lea.hbm %s2666_s8, 8320 }
  0x3a   :  { %p2053_p10 = scmp.ne.s32.totalorder %s2666_s8, %s2052_s30  ;;  %p2056_p11 = scmp.lt.u32.totalorder %s2052_s30, %s2666_s8 }
  0x3c   :  { %p2058_p12 = pnand %p2056_p11, %p2053_p10 }
  0x3e   :  { %2061 = shalt.err (!%p2058_p12)
}
  0x3f   :  { %s2062_s24 = scalar_lea.vmem %s2306_s18, 8320  ;;  %p2067_p0 = scmp.lt.s32.totalorder %s2306_s18, %s2306_s18 }
  0x40   :  { %p2063_p13 = scmp.ne.s32.totalorder %s2306_s18, %s2062_s24  ;;  %p2068_p1 = scmp.lt.s32.totalorder %s2062_s24, %s2062_s24 }
  0x42   :  { %p2069_p2 = por %p2068_p1, %p2067_p0 }
  0x44   :  { %p2070_p3 = pnand %p2069_p2, %p2063_p13 }
  0x46   :  { %2073 = shalt.err (!%p2070_p3)
}
  0x47   :  { %s2180_s7 = smov 640   ;;  %s2181_s16 = smov 40  }
  0x48   :  { %80 = dma.hbm_to_vmem [thread:$0]  %s2666_s8, 8320, %s2306_s18, [#allocation9], %s2180_s7, %s2180_s7, %s2181_s16  }
  0x49   :  { %2162 = dma.done.wait [#allocation3], 4864  }
  0x4a   :  { %2163 = vsyncadd [#allocation3], 4294962432 }
  0x4b   :  { %2164 = dma.done.wait [#allocation6], 32  }
  0x4c   :  { %2165 = vsyncadd [#allocation6], 4294967264 }
  0x4d   :  { %2166 = dma.done.wait [#allocation9], 8320  }
  0x4e   :  { %2167 = vsyncadd [#allocation9], 4294958976  ;;  %v102_v0 = vlaneseq  ;;  %v2347_v5 = vld [vmem:[%s2660_s2] sm:$0x7]  ;;  %v151_v6 = vld [vmem:[#allocation2 + $0x80] sm:$0xff]  ;;  %vm117_vm0 = vcmask 1040384  }
  0x4f   :  { %v152_v7 = vld [vmem:[#allocation2 + $0x88] sm:$0xff]  ;;  %v100_v8 = vmul.f32 %v2347_v5, %v2347_v5  ;;  %v135_v10 = vld [vmem:[#allocation2] sm:$0xff]  ;;  %v153_v12 = vld [vmem:[#allocation2 + $0x90] sm:$0xff]  ;;  %vm121_vm1 = vcmask 352256   ;;  %v2182_v46 = vmov 0.0|0.0   ;;  %vm2183_vm2 = vmmov 0  }
  0x50   :  { %v2337_v1 = vshrl.u32 %v102_v0, 7  ;;  %v1783_v9 = vpack.c.bf16 %v152_v7, %v151_v6  ;;  %v136_v11 = vld [vmem:[#allocation2 + $0x8] sm:$0xff]  ;;  %v154_v14 = vld [vmem:[#allocation2 + $0x98] sm:$0xff]  ;;  %v137_v15 = vld [vmem:[#allocation2 + $0x10] sm:$0xff]  ;;  %1815 = vmatprep.subr.bf16.mxu1 %v2182_v46  ;;  %v2184_v55 = vmov 0.0   ;;  %vm191_vm3 = vcmask 1043456  }
  0x51   :  { %v1785_v13 = vpack.c.bf16 %v136_v11, %v135_v10  ;;  %v138_v16 = vld [vmem:[#allocation2 + $0x18] sm:$0xff]  ;;  %v1787_v20 = vpack.c.bf16 %v154_v14, %v153_v12  ;;  %v155_v21 = vld [vmem:[#allocation2 + $0xa0] sm:$0xff]  ;;  %v156_v22 = vld [vmem:[#allocation2 + $0xa8] sm:$0xff]  ;;  %1647 = vmatprep.mubr.msk.f32.mxu1 %vm2183_vm2, %v2184_v55  ;;  %vm2185_vm4 = vmmov 1   ;;  %vm188_vm6 = vcmask 359424  }
  0x52   :  { %v2340_v2 = vsub.s32 0, %v2337_v1  ;;  %v108_v3 = vsub.s32 1, %v2337_v1  ;;  %v112_v4 = vsub.s32 2, %v2337_v1  ;;  %1784 = vmatprep.subr.bf16.mxu0 %v1783_v9  ;;  %v1789_v23 = vpack.c.bf16 %v138_v16, %v137_v15  ;;  %v139_v28 = vld [vmem:[#allocation2 + $0x20] sm:$0xff]  ;;  %v140_v29 = vld [vmem:[#allocation2 + $0x28] sm:$0xff]  ;;  %v157_v33 = vld [vmem:[#allocation2 + $0xb0] sm:$0xff] }
  0x53   :  { %1786 = vmatpush3.bf16.msra.mxu0 %v1785_v13  ;;  %v1791_v27 = vpack.c.bf16 %v156_v22, %v155_v21  ;;  %v1793_v32 = vpack.c.bf16 %v140_v29, %v139_v28  ;;  %v158_v34 = vld [vmem:[#allocation2 + $0xb8] sm:$0xff]  ;;  %v141_v36 = vld [vmem:[#allocation2 + $0x30] sm:$0xff]  ;;  %v159_v39 = vld [vmem:[#allocation2 + $0xc0] sm:$0xff]  ;;  %vm345_vm7 = vcmask 1044480   ;;  %vm341_vm8 = vcmask 39936  }
  0x54   :  { %v105_v17 = vrot.slane %v100_v8, %v2340_v2  ;;  %v109_v18 = vrot.slane %v100_v8, %v108_v3  ;;  %v113_v19 = vrot.slane %v100_v8, %v112_v4  ;;  %1788 = vmatprep.subr.bf16.mxu0 %v1787_v20  ;;  %v1795_v35 = vpack.c.bf16 %v158_v34, %v157_v33  ;;  %v142_v37 = vld [vmem:[#allocation2 + $0x38] sm:$0xff]  ;;  %v160_v40 = vld [vmem:[#allocation2 + $0xc8] sm:$0xff]  ;;  %v143_v42 = vld [vmem:[#allocation2 + $0x40] sm:$0xff] }
  0x55   :  { %v1797_v38 = vpack.c.bf16 %v142_v37, %v141_v36  ;;  %v1799_v41 = vpack.c.bf16 %v160_v40, %v159_v39  ;;  %v144_v43 = vld [vmem:[#allocation2 + $0x48] sm:$0xff]  ;;  %v161_v44 = vld [vmem:[#allocation2 + $0xd0] sm:$0xff]  ;;  %v162_v47 = vld [vmem:[#allocation2 + $0xd8] sm:$0xff]  ;;  %vm695_vm9 = vcmask 826368   ;;  %vm732_vm10 = vcmask 823296  }
  0x56   :  { %v118_v24 = vsel %vm117_vm0, %v105_v17, 0.0  ;;  %v119_v25 = vsel %vm117_vm0, %v109_v18, 0.0  ;;  %v122_v26 = vsel %vm121_vm1, %v113_v19, 0.0  ;;  %v1801_v45 = vpack.c.bf16 %v144_v43, %v143_v42  ;;  %v167_v48 = vld [vmem:[#allocation2 + $0x100] sm:$0xff]  ;;  %v168_v49 = vld [vmem:[#allocation2 + $0x108] sm:$0xff]  ;;  %v145_v52 = vld [vmem:[#allocation2 + $0x50] sm:$0xff] }
  0x57   :  { %v120_v30 = vadd.f32 %v119_v25, %v118_v24  ;;  %1790 = vmatpush3.bf16.msra.mxu0 %v1789_v23  ;;  %v1803_v50 = vpack.c.bf16 %v162_v47, %v161_v44  ;;  %v1816_v51 = vpack.c.bf16 %v168_v49, %v167_v48  ;;  %v146_v53 = vld [vmem:[#allocation2 + $0x58] sm:$0xff]  ;;  %v163_v54 = vld [vmem:[#allocation2 + $0xe0] sm:$0xff]  ;;  %v164_v57 = vld [vmem:[#allocation2 + $0xe8] sm:$0xff]  ;;  %vm1214_vm12 = vcmask 48128  }
  0x58   :  { %1792 = vmatprep.subr.bf16.mxu0 %v1791_v27  ;;  %v1805_v56 = vpack.c.bf16 %v146_v53, %v145_v52  ;;  %v169_v58 = vld [vmem:[#allocation2 + $0x110] sm:$0xff]  ;;  %v170_v59 = vld [vmem:[#allocation2 + $0x118] sm:$0xff]  ;;  %v1807_v60 = vpack.c.bf16 %v164_v57, %v163_v54  ;;  %v147_v62 = vld [vmem:[#allocation2 + $0x60] sm:$0xff]  ;;  %vm1225_vm13 = vcmask 1045504   ;;  %vm1221_vm14 = vcmask 310272  }
  0x59   :  { %v123_v31 = vadd.f32 %v122_v26, %v120_v30  ;;  %1817 = vmatpush3.bf16.msra.mxu1 %v1816_v51  ;;  %v1819_v61 = vpack.c.bf16 %v170_v59, %v169_v58  ;;  %v148_v63 = vld [vmem:[#allocation2 + $0x68] sm:$0xff]  ;;  %v165_v0 = vld [vmem:[#allocation2 + $0xf0] sm:$0xff]  ;;  %v166_v6 = vld [vmem:[#allocation2 + $0xf8] sm:$0xff]  ;;  %vm1423_vm15 = vcmask 253952   ;;  %vm1341_vm0 = vcmask 261120  }
  0x5a   :  { %1818 = vmatprep.subr.bf16.mxu1 %v2182_v46  ;;  %v171_v7 = vld [vmem:[#allocation2 + $0x120] sm:$0xff]  ;;  %v172_v8 = vld [vmem:[#allocation2 + $0x128] sm:$0xf]  ;;  %v1809_v9 = vpack.c.bf16 %v148_v63, %v147_v62  ;;  %v1811_v10 = vpack.c.bf16 %v166_v6, %v165_v0  ;;  %v149_v12 = vld [vmem:[#allocation2 + $0x70] sm:$0xff]  ;;  %vm1414_vm1 = vcmask 40960  }
  0x5b   :  { %124 = vadd.xlane.f32.xlu0 %v123_v31  ;;  %1794 = vmatpush3.bf16.msra.mxu0 %v1793_v32  ;;  %v1822_v11 = vpack.c.bf16 %v172_v8, %v171_v7  ;;  %v150_v13 = vld [vmem:[#allocation2 + $0x78] sm:$0xff]  ;;  %vm1823_vm5 = vmpackc.low %vm191_vm3, %vm2185_vm4 }
  0x5c   :  { %1796 = vmatprep.subr.bf16.mxu0 %v1795_v35  ;;  %v1813_v14 = vpack.c.bf16 %v150_v13, %v149_v12  ;;  %v419_v29 = vld [vmem:[%s2662_s4] sm:$0x1f]  ;;  %vm2497_vm11 = vmpackc.low %vm695_vm9, %vm695_vm9  ;;  %s2190_s4 = smov 122  }
  0x5d   :  { %1820 = vmatpush3.bf16.msra.mxu1 %v1819_v61 }
  0x5e   :  { %1821 = vmatprep.subr.bf16.mxu1 %v2182_v46 }
  0x5f   :  { %1798 = vmatpush3.bf16.msra.mxu0 %v1797_v38 }
  0x60   :  { %1800 = vmatprep.subr.bf16.mxu0 %v1799_v41 }
  0x61   :  { %1824 = vmatpush3.bf16.msk.msra.mxu1 %vm1823_vm5, %v1822_v11 }
  0x62   :  { %1650 = vmatprep.subr.mxu1 %v2184_v55 }
  0x63   :  { %1802 = vmatpush3.bf16.msra.mxu0 %v1801_v45 }
  0x64   :  { %1804 = vmatprep.subr.bf16.mxu0 %v1803_v50 }
  0x67   :  { %1806 = vmatpush3.bf16.msra.mxu0 %v1805_v56 }
  0x68   :  { %1808 = vmatprep.subr.bf16.mxu0 %v1807_v60 }
  0x6b   :  { %1810 = vmatpush3.bf16.msra.mxu0 %v1809_v9 }
  0x6c   :  { %1812 = vmatprep.subr.bf16.mxu0 %v1811_v10 }
  0x6f   :  { %1814 = vmatpush3.bf16.msra.mxu0 %v1813_v14 }
  0xe8   :  { %v125_v15 = vpop.xlane.xlu0 %124 }
  0xe9   :  { %v126_v16 = vmax.f32 %v125_v15, 1e-16 }
  0xeb   :  { %1948 = vrsqrt.f32 %v126_v16 }
  0xf5   :  { %v1949_v17 = vpop.eup %1948 }
  0xf6   :  { %v132_v18 = vrot.slane %v1949_v17, %v2340_v2 }
  0xf8   :  { %v134_v19 = vmul.f32 %v132_v18, %v2347_v5 }
  0xfa   :  { %v181_v20 = vrot.slane %v134_v19, %v108_v3  ;;  %v185_v21 = vrot.slane %v134_v19, %v112_v4  ;;  %v177_v22 = vrot.slane %v134_v19, %v2340_v2  ;;  %v335_v3 = vld [vmem:[%s2658_s0] sm:$0xf] }
  0xfb   :  { %v340_v2 = vld [vmem:[%s2661_s3] sm:$0x1f]  ;;  %s2186_s3 = smov 6  }
  0xfc   :  { %259 = vmatprep.mubr.f32.mxu0 %v181_v20  ;;  %1648 = vmatmul.mubr.msk.f32.vlgmr.msra.gmra.mrb[0].mxu1 %vm188_vm6, %v185_v21 }
  0xfd   :  { %260 = vmatmul.mubr.f32.vlgmr.msra.gmra.mrb[0].mxu0 %v177_v22  ;;  %1652 = vmatprep.mubr.msk.f32.mxu1 %vm2183_vm2, %v2184_v55 }
  0xfe   :  { %1040 = vmatprep.mubr.f32.mxu0 %v2184_v55 }
 0x1cf   :  { %v331_v23 = vpop.f32.mrb[0].mxu1 }
 0x1d0   :  { %v1568_v24 = vpop.f32.mrb[0].mxu0  ;;  %v1649_v5 = vpop.f32.mrb[1].mxu1 }
 0x1d1   :  { %v1569_v25 = vpop.f32.mrb[1].mxu0 }
 0x1d2   :  { %v1570_v26 = vadd.f32 %v1569_v25, %v1568_v24 }
 0x1d4   :  { %v332_v27 = vadd.f32 %v1570_v26, %v331_v23 }
 0x1d6   :  { %v337_v4 = vrot.slane %v332_v27, 4 }
 0x1d8   :  { %v339_v28 = vsel %vm191_vm3, %v335_v3, %v337_v4  ;;  %v1530_v3 = vld [vmem:[#allocation5] ss:$0 sm:$0xff]  ;;  %v894_v4 = vld [vmem:[#allocation8 + $0x8] sm:$0xff] }
 0x1d9   :  { %1651 = vmatpush3.msk.msra.mxu1 %vm345_vm7, %v339_v28 }
 0x1da   :  { %1653 = vmatmul.mubr.msk.f32.vlgmr.msra.gmra.mrb[2].mxu1 %vm341_vm8, %v340_v2  ;;  %1655 = vmatprep.subr.mxu1 %v2184_v55  ;;  %v899_v2 = vld [vmem:[#allocation8 + $0x30] sm:$0xff] }
 0x1db   :  { %1656 = vmatpush3.msk.msra.mxu1 %vm345_vm7, %v339_v28  ;;  %1657 = vmatprep.mubr.msk.f32.mxu1 %vm2183_vm2, %v2184_v55 }
 0x1dc   :  { %1660 = vmatprep.subr.mxu1 %v2184_v55 }
 0x1de   :  { %1658 = vmatmul.mubr.msk.f32.vlgmr.msra.gmra.mrb[4].mxu1 %vm341_vm8, %v419_v29  ;;  %v893_v29 = vld [vmem:[#allocation8] sm:$0xff] }
 0x1df   :  { %1661 = vmatpush3.msk.msra.mxu1 %vm345_vm7, %v339_v28  ;;  %1662 = vmatprep.mubr.msk.f32.mxu1 %vm2183_vm2, %v2184_v55  ;;  %v1849_v28 = vpack.c.bf16 %v899_v2, %v894_v4 }
 0x1e0   :  { %1825 = vmatprep.subr.bf16.mxu1 %v2182_v46 }
 0x1e1   :  { %1850 = vmatprep.subr.bf16.mxu0 %v1849_v28 }
 0x2ad   :  { %v415_v30 = vpop.f32.mrb[2].mxu1 }
 0x2ae   :  { %494 = vxpose.xlu0.b32.start.end [1/1] (short) (narrow) %v415_v30, 104  ;;  %v1654_v31 = vpop.f32.mrb[3].mxu1  ;;  %v898_v30 = vld [vmem:[#allocation8 + $0x28] sm:$0xff] }
 0x2af   :  { %v1851_v31 = vpack.c.bf16 %v898_v30, %v893_v29 }
 0x2b1   :  { %v2398_v32 = vpop.f32.mrb[4].mxu1  ;;  %1852 = vmatpush1.bf16.msra.mxu0 %v1851_v31 }
 0x2b2   :  { %v1659_v33 = vpop.f32.mrb[5].mxu1 }
 0x2b3   :  { %v904_v33 = vld [vmem:[#allocation8 + $0x58] sm:$0xff] }
 0x307   :  { %1211 = vrot.lane.b32.xlu0 %v1530_v3, %s2186_s3 }
 0x32e   :  { %v510_v34 = vpop.trf.xlu0 }
 0x32f   :  { %1663 = vmatmul.mubr.msk.f32.vlgmr.msra.gmra.mrb[6].mxu1 %vm341_vm8, %v510_v34  ;;  %v909_v34 = vld [vmem:[#allocation8 + $0x80] sm:$0xff] }
 0x330   :  { %1665 = vmatprep.mubr.msk.f32.mxu1 %vm2183_vm2, %v2184_v55 }
 0x332   :  { %v511_v35 = vpop.trf.xlu0 }
 0x333   :  { %1666 = vmatmul.mubr.msk.f32.gmra.mrb[8].mxu1 %vm341_vm8, %v511_v35  ;;  %v1853_v35 = vpack.c.bf16 %v909_v34, %v904_v33 }
 0x334   :  { %1668 = vmatprep.mubr.msk.f32.mxu1 %vm2183_vm2, %v2184_v55 }
 0x335   :  { %1854 = vmatprep.subr.bf16.mxu0 %v1853_v35 }
 0x336   :  { %v512_v36 = vpop.trf.xlu0 }
 0x337   :  { %1669 = vmatmul.mubr.msk.f32.gmra.mrb[10].mxu1 %vm341_vm8, %v512_v36  ;;  %v903_v36 = vld [vmem:[#allocation8 + $0x50] sm:$0xff] }
 0x338   :  { %1671 = vmatprep.mubr.msk.f32.mxu1 %vm2183_vm2, %v2184_v55 }
 0x33a   :  { %v513_v37 = vpop.trf.xlu0 }
 0x33b   :  { %1672 = vmatmul.mubr.msk.f32.gmra.mrb[12].mxu1 %vm341_vm8, %v513_v37  ;;  %v908_v37 = vld [vmem:[#allocation8 + $0x78] sm:$0xff] }
 0x33c   :  { %1674 = vmatprep.mubr.msk.f32.mxu1 %vm2183_vm2, %v2184_v55 }
 0x33e   :  { %v514_v38 = vpop.trf.xlu0 }
 0x33f   :  { %1675 = vmatmul.mubr.msk.f32.gmra.mrb[14].mxu1 %vm341_vm8, %v514_v38  ;;  %v1855_v38 = vpack.c.bf16 %v908_v37, %v903_v36 }
 0x340   :  { %1677 = vmatprep.mubr.msk.f32.mxu1 %vm2183_vm2, %v2184_v55 }
 0x341   :  { %1856 = vmatpush1.bf16.msra.mxu0 %v1855_v38 }
 0x342   :  { %v515_v39 = vpop.trf.xlu0 }
 0x343   :  { %1678 = vmatmul.mubr.msk.f32.gmra.mrb[16].mxu1 %vm341_vm8, %v515_v39  ;;  %v914_v39 = vld [vmem:[#allocation8 + $0xa8] sm:$0xff] }
 0x344   :  { %1680 = vmatprep.mubr.msk.f32.mxu1 %vm2183_vm2, %v2184_v55 }
 0x346   :  { %v516_v40 = vpop.trf.xlu0 }
 0x347   :  { %1681 = vmatmul.mubr.msk.f32.gmra.mrb[18].mxu1 %vm341_vm8, %v516_v40  ;;  %v919_v40 = vld [vmem:[#allocation8 + $0xd0] sm:$0xff] }
 0x348   :  { %1683 = vmatprep.mubr.msk.f32.mxu1 %vm2183_vm2, %v2184_v55 }
 0x34a   :  { %v517_v41 = vpop.trf.xlu0 }
 0x34b   :  { %1684 = vmatmul.mubr.msk.f32.gmra.mrb[20].mxu1 %vm341_vm8, %v517_v41  ;;  %v913_v41 = vld [vmem:[#allocation8 + $0xa0] sm:$0xff] }
 0x34c   :  { %1686 = vmatprep.mubr.msk.f32.mxu1 %vm2183_vm2, %v2184_v55 }
 0x34e   :  { %v518_v42 = vpop.trf.xlu0 }
 0x34f   :  { %1687 = vmatmul.mubr.msk.f32.gmra.mrb[22].mxu1 %vm341_vm8, %v518_v42  ;;  %v1857_v42 = vpack.c.bf16 %v919_v40, %v914_v39 }
 0x350   :  { %1689 = vmatprep.mubr.msk.f32.mxu1 %vm2183_vm2, %v2184_v55 }
 0x351   :  { %1858 = vmatprep.subr.bf16.mxu0 %v1857_v42 }
 0x352   :  { %v519_v43 = vpop.trf.xlu0 }
 0x353   :  { %1690 = vmatmul.mubr.msk.f32.gmra.mrb[24].mxu1 %vm341_vm8, %v519_v43  ;;  %v918_v43 = vld [vmem:[#allocation8 + $0xc8] sm:$0xff] }
 0x354   :  { %1692 = vmatprep.mubr.msk.f32.mxu1 %vm2183_vm2, %v2184_v55 }
 0x356   :  { %v520_v44 = vpop.trf.xlu0 }
 0x357   :  { %1693 = vmatmul.mubr.msk.f32.gmra.mrb[26].mxu1 %vm341_vm8, %v520_v44  ;;  %v1859_v44 = vpack.c.bf16 %v918_v43, %v913_v41 }
 0x358   :  { %1695 = vmatprep.mubr.msk.f32.mxu1 %vm2183_vm2, %v2184_v55 }
 0x359   :  { %1860 = vmatpush1.bf16.msra.mxu0 %v1859_v44  ;;  %v897_v44 = vld [vmem:[#allocation8 + $0x20] sm:$0xff] }
 0x35a   :  { %v521_v45 = vpop.trf.xlu0 }
 0x35b   :  { %1696 = vmatmul.mubr.msk.f32.gmra.mrb[28].mxu1 %vm341_vm8, %v521_v45 }
 0x35c   :  { %1698 = vmatprep.mubr.msk.f32.mxu1 %vm2183_vm2, %v2184_v55 }
 0x35e   :  { %v522_v47 = vpop.trf.xlu0 }
 0x35f   :  { %1699 = vmatmul.mubr.msk.f32.gmra.mrb[30].mxu1 %vm341_vm8, %v522_v47 }
 0x360   :  { %1727 = vmatprep.mubr.msk.f32.mxu1 %vm2183_vm2, %v2184_v55 }
 0x402   :  { %v2439_v48 = vpop.f32.mrb[6].mxu1 }
 0x403   :  { %v1664_v49 = vpop.f32.mrb[7].mxu1  ;;  %v696_v50 = vsel %vm695_vm9, %v2439_v48, -inf }
 0x404   :  { %697 = vmax.xlane.f32.xlu1 %v696_v50 }
 0x406   :  { %v2443_v51 = vpop.f32.mrb[8].mxu1 }
 0x407   :  { %v1667_v52 = vpop.f32.mrb[9].mxu1  ;;  %v699_v53 = vsel %vm695_vm9, %v2443_v51, -inf }
 0x408   :  { %700 = vmax.xlane.f32.xlu1 %v699_v53 }
 0x40a   :  { %v2447_v54 = vpop.f32.mrb[10].mxu1 }
 0x40b   :  { %v1670_v56 = vpop.f32.mrb[11].mxu1  ;;  %v702_v57 = vsel %vm695_vm9, %v2447_v54, -inf }
 0x40c   :  { %703 = vmax.xlane.f32.xlu1 %v702_v57 }
 0x40e   :  { %v2451_v58 = vpop.f32.mrb[12].mxu1 }
 0x40f   :  { %v1673_v59 = vpop.f32.mrb[13].mxu1  ;;  %v705_v60 = vsel %vm695_vm9, %v2451_v58, -inf }
 0x410   :  { %706 = vmax.xlane.f32.xlu1 %v705_v60 }
 0x412   :  { %v2455_v61 = vpop.f32.mrb[14].mxu1 }
 0x413   :  { %v1676_v62 = vpop.f32.mrb[15].mxu1  ;;  %v708_v63 = vsel %vm695_vm9, %v2455_v61, -inf }
 0x414   :  { %709 = vmax.xlane.f32.xlu1 %v708_v63 }
 0x416   :  { %v2459_v0 = vpop.f32.mrb[16].mxu1 }
 0x417   :  { %v1679_v6 = vpop.f32.mrb[17].mxu1  ;;  %v711_v7 = vsel %vm695_vm9, %v2459_v0, -inf }
 0x418   :  { %712 = vmax.xlane.f32.xlu1 %v711_v7 }
 0x41a   :  { %v2463_v8 = vpop.f32.mrb[18].mxu1 }
 0x41b   :  { %v1682_v9 = vpop.f32.mrb[19].mxu1  ;;  %v714_v10 = vsel %vm695_vm9, %v2463_v8, -inf }
 0x41c   :  { %715 = vmax.xlane.f32.xlu1 %v714_v10 }
 0x41e   :  { %v2467_v11 = vpop.f32.mrb[20].mxu1 }
 0x41f   :  { %v1685_v12 = vpop.f32.mrb[21].mxu1  ;;  %v717_v13 = vsel %vm695_vm9, %v2467_v11, -inf }
 0x420   :  { %718 = vmax.xlane.f32.xlu1 %v717_v13 }
 0x422   :  { %v2471_v14 = vpop.f32.mrb[22].mxu1 }
 0x423   :  { %v1688_v15 = vpop.f32.mrb[23].mxu1  ;;  %v720_v16 = vsel %vm695_vm9, %v2471_v14, -inf }
 0x424   :  { %721 = vmax.xlane.f32.xlu1 %v720_v16 }
 0x426   :  { %v2475_v17 = vpop.f32.mrb[24].mxu1 }
 0x427   :  { %v1691_v18 = vpop.f32.mrb[25].mxu1  ;;  %v723_v19 = vsel %vm695_vm9, %v2475_v17, -inf }
 0x428   :  { %724 = vmax.xlane.f32.xlu1 %v723_v19 }
 0x42a   :  { %v2479_v20 = vpop.f32.mrb[26].mxu1 }
 0x42b   :  { %v1694_v21 = vpop.f32.mrb[27].mxu1  ;;  %v726_v22 = vsel %vm695_vm9, %v2479_v20, -inf }
 0x42c   :  { %727 = vmax.xlane.f32.xlu1 %v726_v22 }
 0x42e   :  { %v2483_v23 = vpop.f32.mrb[28].mxu1 }
 0x42f   :  { %v1697_v24 = vpop.f32.mrb[29].mxu1  ;;  %v729_v5 = vsel %vm695_vm9, %v2483_v23, -inf }
 0x430   :  { %730 = vmax.xlane.f32.xlu1 %v729_v5 }
 0x432   :  { %v2487_v25 = vpop.f32.mrb[30].mxu1 }
 0x433   :  { %v733_v26 = vsel %vm732_vm10, %v2487_v25, -inf  ;;  %v1700_v27 = vpop.f32.mrb[31].mxu1 }
 0x434   :  { %734 = vmax.xlane.f32.xlu1 %v733_v26 }
 0x491   :  { %v698_v45 = vpop.xlane.xlu1 %697 }
 0x492   :  { %v736_v47 = vsub.f32 %v2439_v48, %v698_v45  ;;  %v902_v45 = vld [vmem:[#allocation8 + $0x48] sm:$0xff] }
 0x494   :  { %v749_v49 = vmul.f32 1.442695, %v736_v47 }
 0x495   :  { %v701_v50 = vpop.xlane.xlu1 %700 }
 0x496   :  { %v737_v52 = vsub.f32 %v2443_v51, %v701_v50  ;;  %1950 = vpow2.f32 %v749_v49  ;;  %v907_v49 = vld [vmem:[#allocation8 + $0x70] sm:$0xff]  ;;  %v912_v50 = vld [vmem:[#allocation8 + $0x98] sm:$0xff] }
 0x498   :  { %v751_v53 = vmul.f32 1.442695, %v737_v52  ;;  %v493_v52 = vsel %vm345_vm7, %v2398_v32, 1.0  ;;  %v929_v32 = vld [vmem:[#allocation8 + $0x120] sm:$0xff] }
 0x499   :  { %v704_v56 = vpop.xlane.xlu1 %703 }
 0x49a   :  { %1952 = vpow2.f32 %v751_v53  ;;  %v738_v57 = vsub.f32 %v2447_v54, %v704_v56  ;;  %v1901_v53 = vpack.c.bf16 %v912_v50, %v907_v49  ;;  %v917_v56 = vld [vmem:[#allocation8 + $0xc0] sm:$0xff] }
 0x49c   :  { %v753_v59 = vmul.f32 1.442695, %v738_v57  ;;  %v922_v57 = vld [vmem:[#allocation8 + $0xe8] sm:$0xff] }
 0x49d   :  { %v707_v60 = vpop.xlane.xlu1 %706 }
 0x49e   :  { %v739_v62 = vsub.f32 %v2451_v58, %v707_v60  ;;  %1954 = vpow2.f32 %v753_v59  ;;  %v1904_v59 = vpack.c.bf16 %v922_v57, %v917_v56  ;;  %v924_v60 = vld [vmem:[#allocation8 + $0xf8] sm:$0xff]  ;;  %v941_v57 = vld [vmem:[#allocation8 + $0x180] sm:$0xff] }
 0x49f   :  { %v936_v56 = vld [vmem:[#allocation8 + $0x158] sm:$0xff] }
 0x4a0   :  { %v755_v63 = vmul.f32 1.442695, %v739_v62  ;;  %v1951_v7 = vpop.eup %1950  ;;  %v1861_v62 = vpack.c.bf16 %v929_v32, %v924_v60  ;;  %v1889_v60 = vpack.c.bf16 %v941_v57, %v936_v56  ;;  %v935_v32 = vld [vmem:[#allocation8 + $0x150] sm:$0xff]  ;;  %v1337_v57 = vld [vmem:[%s2669_s11] sm:$0x1] }
 0x4a1   :  { %v710_v6 = vpop.xlane.xlu1 %709 }
 0x4a2   :  { %1956 = vpow2.f32 %v755_v63  ;;  %v740_v48 = vsub.f32 %v2455_v61, %v710_v6  ;;  %v923_v63 = vld [vmem:[#allocation8 + $0xf0] sm:$0xff]  ;;  %v928_v6 = vld [vmem:[#allocation8 + $0x118] sm:$0xff]  ;;  %1862 = vmatprep.subr.bf16.mxu0 %v1861_v62 }
 0x4a3   :  { %v940_v62 = vld [vmem:[#allocation8 + $0x178] sm:$0xff] }
 0x4a4   :  { %v1953_v9 = vpop.eup %1952  ;;  %v757_v10 = vmul.f32 1.442695, %v740_v48  ;;  %v1863_v48 = vpack.c.bf16 %v928_v6, %v923_v63  ;;  %v946_v63 = vld [vmem:[#allocation8 + $0x1a8] sm:$0xff]  ;;  %v951_v6 = vld [vmem:[#allocation8 + $0x1d0] sm:$0xff] }
 0x4a5   :  { %v713_v54 = vpop.xlane.xlu1 %712  ;;  %v1826_v12 = vpack.c.bf16 %v1953_v9, %v1951_v7  ;;  %v927_v7 = vld [vmem:[#allocation8 + $0x110] sm:$0xff]  ;;  %v932_v9 = vld [vmem:[#allocation8 + $0x138] sm:$0xff] }
 0x4a6   :  { %v741_v13 = vsub.f32 %v2459_v0, %v713_v54  ;;  %1958 = vpow2.f32 %v757_v10  ;;  %v1907_v51 = vpack.c.bf16 %v932_v9, %v927_v7  ;;  %1864 = vmatpush1.bf16.msra.mxu0 %v1863_v48  ;;  %v934_v10 = vld [vmem:[#allocation8 + $0x148] sm:$0xff]  ;;  %v939_v54 = vld [vmem:[#allocation8 + $0x170] sm:$0xff]  ;;  %v1891_v48 = vpack.c.bf16 %v940_v62, %v935_v32  ;;  %v945_v9 = vld [vmem:[#allocation8 + $0x1a0] sm:$0xff] }
 0x4a7   :  { %1828 = vmatpush3.bf16.xpose.msk.msra.mxu1 %vm2497_vm11, %v1826_v12  ;;  %v1865_v12 = vpack.c.bf16 %v939_v54, %v934_v10  ;;  %v1893_v7 = vpack.c.bf16 %v951_v6, %v946_v63  ;;  %v956_v54 = vld [vmem:[#allocation8 + $0x1f8] sm:$0x1f] }
 0x4a8   :  { %v759_v58 = vmul.f32 1.442695, %v741_v13  ;;  %1829 = vmatprep.subr.bf16.mxu1 %v2182_v46  ;;  %v1955_v16 = vpop.eup %1954  ;;  %v933_v13 = vld [vmem:[#allocation8 + $0x140] sm:$0xff] }
 0x4a9   :  { %v716_v61 = vpop.xlane.xlu1 %715  ;;  %1866 = vmatprep.subr.bf16.mxu0 %v1865_v12  ;;  %v1216_v12 = vld [vmem:[%s2667_s9] sm:$0xff] }
 0x4aa   :  { %1960 = vpow2.f32 %v759_v58  ;;  %v742_v15 = vsub.f32 %v2463_v8, %v716_v61  ;;  %v938_v58 = vld [vmem:[#allocation8 + $0x168] sm:$0xff] }
 0x4ab   :  { %v1867_v61 = vpack.c.bf16 %v938_v58, %v933_v13  ;;  %v1217_v13 = vld [vmem:[%s2667_s9 + $0x8] sm:$0xff] }
 0x4ac   :  { %v1957_v18 = vpop.eup %1956  ;;  %v761_v19 = vmul.f32 1.442695, %v742_v15  ;;  %v937_v15 = vld [vmem:[#allocation8 + $0x160] sm:$0xff]  ;;  %v955_v58 = vld [vmem:[#allocation8 + $0x1f0] sm:$0x1f] }
 0x4ad   :  { %v719_v21 = vpop.xlane.xlu1 %718  ;;  %v1830_v22 = vpack.c.bf16 %v1957_v18, %v1955_v16  ;;  %v942_v16 = vld [vmem:[#allocation8 + $0x188] sm:$0xff]  ;;  %1868 = vmatpush1.bf16.msra.mxu0 %v1867_v61  ;;  %v1916_v61 = vpack.c.bf16 %v1217_v13, %v1216_v12 }
 0x4ae   :  { %v743_v24 = vsub.f32 %v2467_v11, %v719_v21  ;;  %1962 = vpow2.f32 %v761_v19  ;;  %v1910_v18 = vpack.c.bf16 %v942_v16, %v937_v15  ;;  %v944_v19 = vld [vmem:[#allocation8 + $0x198] sm:$0xff]  ;;  %v949_v21 = vld [vmem:[#allocation8 + $0x1c0] sm:$0xff] }
 0x4af   :  { %1832 = vmatpush3.bf16.xpose.msk.msra.mxu1 %vm2497_vm11, %v1830_v22  ;;  %v1869_v22 = vpack.c.bf16 %v949_v21, %v944_v19  ;;  %v1218_v15 = vld [vmem:[%s2667_s9 + $0x10] sm:$0xff]  ;;  %v1219_v16 = vld [vmem:[%s2667_s9 + $0x18] sm:$0xff]  ;;  %v1204_v19 = vld [vmem:[%s2663_s5] sm:$0x1]  ;;  %v1212_v21 = vpop.permute.xlu0 %1211  ;;  %s2187_s5 = smov 64  }
 0x4b0   :  { %v763_v0 = vmul.f32 1.442695, %v743_v24  ;;  %1833 = vmatprep.subr.bf16.mxu1 %v2182_v46  ;;  %v1959_v27 = vpop.eup %1958  ;;  %v943_v24 = vld [vmem:[#allocation8 + $0x190] sm:$0xff] }
 0x4b1   :  { %v722_v5 = vpop.xlane.xlu1 %721  ;;  %1870 = vmatprep.subr.bf16.mxu0 %v1869_v22  ;;  %v1220_v22 = vld [vmem:[%s2667_s9 + $0x20] sm:$0x3f]  ;;  %s2188_s9 = smov 32  }
 0x4b2   :  { %1964 = vpow2.f32 %v763_v0  ;;  %v744_v26 = vsub.f32 %v2471_v14, %v722_v5  ;;  %v948_v0 = vld [vmem:[#allocation8 + $0x1b8] sm:$0xff] }
 0x4b3   :  { %v1871_v5 = vpack.c.bf16 %v948_v0, %v943_v24  ;;  %v1215_v24 = vsel %vm1214_vm12, %v1204_v19, %v1212_v21 }
 0x4b4   :  { %v1961_v8 = vpop.eup %1960  ;;  %v765_v3 = vmul.f32 1.442695, %v744_v26  ;;  %v947_v26 = vld [vmem:[#allocation8 + $0x1b0] sm:$0xff] }
 0x4b5   :  { %v725_v4 = vpop.xlane.xlu1 %724  ;;  %v1834_v2 = vpack.c.bf16 %v1961_v8, %v1959_v27  ;;  %v952_v27 = vld [vmem:[#allocation8 + $0x1d8] sm:$0xff]  ;;  %1872 = vmatpush1.bf16.msra.mxu0 %v1871_v5 }
 0x4b6   :  { %v745_v28 = vsub.f32 %v2475_v17, %v725_v4  ;;  %1966 = vpow2.f32 %v765_v3  ;;  %v1913_v8 = vpack.c.bf16 %v952_v27, %v947_v26  ;;  %v954_v3 = vld [vmem:[#allocation8 + $0x1e8] sm:$0x1f]  ;;  %v896_v4 = vld [vmem:[#allocation8 + $0x18] sm:$0xff] }
 0x4b7   :  { %1836 = vmatpush3.bf16.xpose.msk.msra.mxu1 %vm2497_vm11, %v1834_v2  ;;  %v901_v2 = vld [vmem:[#allocation8 + $0x40] sm:$0xff]  ;;  %1522 = vmatprep.subr.msk.mxu0 %vm345_vm7, %v954_v3 }
 0x4b8   :  { %v767_v11 = vmul.f32 1.442695, %v745_v28  ;;  %1837 = vmatprep.subr.bf16.mxu1 %v2182_v46  ;;  %v1963_v31 = vpop.eup %1962  ;;  %v953_v28 = vld [vmem:[#allocation8 + $0x1e0] sm:$0x1f] }
 0x4b9   :  { %v728_v29 = vpop.xlane.xlu1 %727  ;;  %1523 = vmatpush1.msk.msra.mxu0 %vm345_vm7, %v953_v28 }
 0x4ba   :  { %1968 = vpow2.f32 %v767_v11  ;;  %v746_v30 = vsub.f32 %v2479_v20, %v728_v29  ;;  %v1873_v11 = vpack.c.bf16 %v901_v2, %v896_v4  ;;  %v957_v29 = vld [vmem:[#allocation8 + $0x200] sm:$0x1f] }
 0x4bc   :  { %v1965_v14 = vpop.eup %1964  ;;  %v769_v33 = vmul.f32 1.442695, %v746_v30  ;;  %1874 = vmatprep.subr.bf16.mxu0 %v1873_v11 }
 0x4bd   :  { %v731_v34 = vpop.xlane.xlu1 %730  ;;  %v1838_v35 = vpack.c.bf16 %v1965_v14, %v1963_v31  ;;  %v890_v14 = vsub.s32 5, %v2337_v1 }
 0x4be   :  { %v747_v36 = vsub.f32 %v2483_v23, %v731_v34  ;;  %1970 = vpow2.f32 %v769_v33  ;;  %v895_v33 = vld [vmem:[#allocation8 + $0x10] sm:$0xff]  ;;  %v900_v34 = vld [vmem:[#allocation8 + $0x38] sm:$0xff] }
 0x4bf   :  { %1840 = vmatpush3.bf16.xpose.msk.msra.mxu1 %vm2497_vm11, %v1838_v35 }
 0x4c0   :  { %v771_v17 = vmul.f32 1.442695, %v747_v36  ;;  %1841 = vmatprep.subr.bf16.mxu1 %v2182_v46  ;;  %v1967_v38 = vpop.eup %1966  ;;  %v906_v36 = vld [vmem:[#allocation8 + $0x68] sm:$0xff] }
 0x4c1   :  { %v735_v37 = vpop.xlane.xlu1 %734 }
 0x4c2   :  { %1972 = vpow2.f32 %v771_v17  ;;  %v748_v20 = vsub.f32 %v2487_v25, %v735_v37  ;;  %v1898_v25 = vpack.c.bf16 %v902_v45, %v897_v44  ;;  %v911_v17 = vld [vmem:[#allocation8 + $0x90] sm:$0xff]  ;;  %v920_v45 = vld [vmem:[#allocation8 + $0xd8] sm:$0xff] }
 0x4c3   :  { %v915_v44 = vld [vmem:[#allocation8 + $0xb0] sm:$0xff] }
 0x4c4   :  { %v1969_v39 = vpop.eup %1968  ;;  %v773_v41 = vmul.f32 1.442695, %v748_v20  ;;  %v1877_v20 = vpack.c.bf16 %v911_v17, %v906_v36  ;;  %v1883_v49 = vpack.c.bf16 %v920_v45, %v915_v44  ;;  %v1334_v44 = vld [vmem:[%s2668_s10 + $0x8] sm:$0xff]  ;;  %v1335_v45 = vld [vmem:[%s2668_s10 + $0x10] sm:$0xff] }
 0x4c5   :  { %v1842_v40 = vpack.c.bf16 %v1969_v39, %v1967_v38  ;;  %v1875_v38 = vpack.c.bf16 %v900_v34, %v895_v33 }
 0x4c6   :  { %1974 = vpow2.f32 %v773_v41  ;;  %v910_v41 = vld [vmem:[#allocation8 + $0x88] sm:$0xff] }
 0x4c7   :  { %1844 = vmatpush3.bf16.xpose.msk.msra.mxu1 %vm2497_vm11, %v1842_v40  ;;  %v905_v40 = vld [vmem:[#allocation8 + $0x60] sm:$0xff] }
 0x4c8   :  { %1845 = vmatprep.subr.bf16.mxu1 %v2182_v46  ;;  %v1971_v23 = vpop.eup %1970 }
 0x4cc   :  { %v1973_v42 = vpop.eup %1972 }
 0x4cd   :  { %v1846_v43 = vpack.c.bf16 %v1973_v42, %v1971_v23  ;;  %v916_v23 = vld [vmem:[#allocation8 + $0xb8] sm:$0xff]  ;;  %v921_v42 = vld [vmem:[#allocation8 + $0xe0] sm:$0xff] }
 0x4ce   :  { %v1881_v1 = vpack.c.bf16 %v921_v42, %v916_v23 }
 0x4cf   :  { %1848 = vmatpush3.bf16.xpose.msk.msra.mxu1 %vm2497_vm11, %v1846_v43  ;;  %v1879_v43 = vpack.c.bf16 %v910_v41, %v905_v40 }
 0x4d0   :  { %1725 = vmatprep.subr.mxu1 %v2184_v55  ;;  %v1975_v47 = vpop.eup %1974 }
 0x4d7   :  { %1726 = vmatpush3.xpose.msk.msra.mxu1 %vm695_vm9, %v1975_v47  ;;  %v926_v47 = vld [vmem:[#allocation8 + $0x108] sm:$0xff] }
 0x4d8   :  { %1897 = vmatprep.subr.bf16.mxu1 %v2182_v46 }
 0x4da   :  { %1728 = vmatmul.mubr.msk.f32.vlgmr.msra.gmra.mrb[32].mxu1 %vm695_vm9, %v493_v52  ;;  %v925_v52 = vld [vmem:[#allocation8 + $0x100] sm:$0xff] }
 0x4db   :  { %1899 = vmatpush3.bf16.msra.mxu1 %v1898_v25  ;;  %1756 = vmatprep.mubr.msk.f32.mxu1 %vm2183_vm2, %v2184_v55  ;;  %v931_v25 = vld [vmem:[#allocation8 + $0x130] sm:$0xff] }
 0x4dc   :  { %1900 = vmatprep.subr.bf16.mxu1 %v2182_v46  ;;  %v1885_v50 = vpack.c.bf16 %v931_v25, %v926_v47  ;;  %v1336_v25 = vld [vmem:[%s2668_s10 + $0x18] sm:$0xff] }
 0x4df   :  { %1902 = vmatpush3.bf16.msra.mxu1 %v1901_v53  ;;  %v930_v53 = vld [vmem:[#allocation8 + $0x128] sm:$0xff] }
 0x4e0   :  { %1903 = vmatprep.subr.bf16.mxu1 %v2182_v46 }
 0x4e3   :  { %1905 = vmatpush3.bf16.msra.mxu1 %v1904_v59  ;;  %v1887_v59 = vpack.c.bf16 %v930_v53, %v925_v52 }
 0x4e4   :  { %1906 = vmatprep.subr.bf16.mxu1 %v2182_v46 }
 0x4e7   :  { %1908 = vmatpush3.bf16.msra.mxu1 %v1907_v51  ;;  %v950_v51 = vld [vmem:[#allocation8 + $0x1c8] sm:$0xff] }
 0x4e8   :  { %1909 = vmatprep.subr.bf16.mxu1 %v2182_v46  ;;  %v1895_v10 = vpack.c.bf16 %v950_v51, %v945_v9 }
 0x4eb   :  { %1911 = vmatpush3.bf16.msra.mxu1 %v1910_v18  ;;  %v1919_v18 = vpack.c.bf16 %v1219_v16, %v1218_v15 }
 0x4ec   :  { %1912 = vmatprep.subr.bf16.mxu1 %v2182_v46 }
 0x4ef   :  { %1914 = vmatpush3.bf16.msra.mxu1 %v1913_v8 }
 0x4f0   :  { %1754 = vmatprep.subr.mxu1 %v2184_v55 }
 0x4f3   :  { %1755 = vmatpush3.msk.msra.mxu1 %vm345_vm7, %v957_v29 }
 0x5ad   :  { %v883_v30 = vpop.f32.mrb[32].mxu1 }
 0x5ae   :  { %1976 = vrcp.f32 %v883_v30  ;;  %v1729_v31 = vpop.f32.mrb[33].mxu1 }
 0x5b8   :  { %v1977_v35 = vpop.eup %1976 }
 0x5b9   :  { %v891_v37 = vrot.slane %v1977_v35, %v890_v14 }
 0x5bb   :  { %v892_v39 = vmul.f32 %v891_v37, %v883_v30 }
 0x5bd   :  { %1524 = vmatmul.mubr.msk.f32.vlgmr.msra.gmra.mrb[2].mxu0 %vm695_vm9, %v892_v39  ;;  %1757 = vmatmul.mubr.msk.f32.vlgmr.msra.gmra.mrb[34].mxu1 %vm695_vm9, %v892_v39 }
 0x5be   :  { %1876 = vmatpush1.bf16.msra.mxu0 %v1875_v38  ;;  %1111 = vmatprep.mubr.f32.mxu0 %v2184_v55 }
 0x5bf   :  { %1878 = vmatprep.subr.bf16.mxu0 %v1877_v20 }
 0x5c2   :  { %1880 = vmatpush1.bf16.msra.mxu0 %v1879_v43 }
 0x5c3   :  { %1882 = vmatprep.subr.bf16.mxu0 %v1881_v1  ;;  %v1333_v1 = vld [vmem:[%s2668_s10] sm:$0xff]  ;;  %s2189_s10 = smov [#allocation10]  }
 0x5c4   :  { %v1922_v47 = vpack.c.bf16 %v1334_v44, %v1333_v1  ;;  %s1436_s3 = sshll.u32 %s2189_s10, 4  ;;  %s1437_s3 = int_to_ptr.vmem [resolvable:$true] %s1436_s3 }
 0x5c5   :  { %s2074_s19 = scalar_lea.vmem %s1437_s3, 16  ;;  %s2078_s28 = scalar_lea.vmem %s1437_s3, 32 }
 0x5c6   :  { %1884 = vmatpush1.bf16.msra.mxu0 %v1883_v49  ;;  %v1925_v49 = vpack.c.bf16 %v1336_v25, %v1335_v45  ;;  %p2075_p4 = scmp.ne.s32.totalorder %s1437_s3, %s2074_s19  ;;  %p2079_p5 = scmp.lt.s32.totalorder %s1437_s3, %s1437_s3 }
 0x5c7   :  { %1886 = vmatprep.subr.bf16.mxu0 %v1885_v50  ;;  %p2080_p6 = scmp.lt.s32.totalorder %s2078_s28, %s2074_s19 }
 0x5c9   :  { %p2081_p7 = por %p2080_p6, %p2079_p5 }
 0x5ca   :  { %1888 = vmatpush1.bf16.msra.mxu0 %v1887_v59 }
 0x5cb   :  { %1890 = vmatprep.subr.bf16.mxu0 %v1889_v60  ;;  %p2082_p8 = pnand %p2081_p7, %p2075_p4 }
 0x5ce   :  { %1892 = vmatpush1.bf16.msra.mxu0 %v1891_v48 }
 0x5cf   :  { %1894 = vmatprep.subr.bf16.mxu0 %v1893_v7 }
 0x5d2   :  { %1896 = vmatpush1.bf16.msra.mxu0 %v1895_v10 }
 0x5d3   :  { %1525 = vmatprep.subr.msk.mxu0 %vm345_vm7, %v956_v54 }
 0x5d6   :  { %1526 = vmatpush1.msk.msra.mxu0 %vm345_vm7, %v955_v58 }
 0x5d7   :  { %1527 = vmatmul.mubr.msk.f32.vlgmr.msra.gmra.mrb[4].mxu0 %vm695_vm9, %v892_v39  ;;  %1915 = vmatprep.subr.bf16.mxu0 %v2182_v46 }
 0x5d8   :  { %1917 = vmatpush3.bf16.msra.mxu0 %v1916_v61  ;;  %1769 = vmatprep.mubr.msk.f32.mxu0 %vm2183_vm2, %v2184_v55 }
 0x5d9   :  { %1918 = vmatprep.subr.bf16.mxu0 %v2182_v46 }
 0x5dc   :  { %1920 = vmatpush3.bf16.msra.mxu0 %v1919_v18 }
 0x5dd   :  { %1767 = vmatprep.subr.mxu0 %v2184_v55 }
 0x5e0   :  { %1768 = vmatpush3.msk.msra.mxu0 %vm1225_vm13, %v1220_v22 }
 0x5e1   :  { %1770 = vmatmul.mubr.msk.f32.vlgmr.msra.gmra.mrb[6].mxu0 %vm1221_vm14, %v1215_v24  ;;  %1921 = vmatprep.subr.bf16.mxu0 %v2182_v46 }
 0x5e2   :  { %1780 = vmatprep.mubr.msk.f32.mxu0 %vm2183_vm2, %v2184_v55  ;;  %v1534_v55 = vld [vmem:[#allocation7] ss:$0 sm:$0xff]  ;;  %1923 = vmatpush3.bf16.msra.mxu0 %v1922_v47 }
 0x5e3   :  { %1924 = vmatprep.subr.bf16.mxu0 %v2182_v46 }
 0x5e6   :  { %1926 = vmatpush3.bf16.msra.mxu0 %v1925_v49 }
 0x690   :  { %v1042_v0 = vpop.f32.mrb[2].mxu0  ;;  %v1184_v5 = vpop.f32.mrb[34].mxu1 }
 0x691   :  { %v1044_v26 = vpop.f32.mrb[3].mxu0  ;;  %v1758_v27 = vpop.f32.mrb[35].mxu1  ;;  %v1201_v30 = vrot.slane %v1184_v5, 4 }
 0x692   :  { %v1189_v8 = vrot.slane %v1044_v26, 1 }
 0x694   :  { %v1191_v3 = vadd.f32 %v1189_v8, %v1042_v0 }
 0x6aa   :  { %v1113_v4 = vpop.f32.mrb[4].mxu0 }
 0x6ab   :  { %v1193_v2 = vrot.slane %v1113_v4, 2  ;;  %v1115_v28 = vpop.f32.mrb[5].mxu0 }
 0x6ac   :  { %v1197_v11 = vrot.slane %v1115_v28, 3 }
 0x6ad   :  { %v1195_v29 = vadd.f32 %v1193_v2, %v1191_v3 }
 0x6af   :  { %v1199_v31 = vadd.f32 %v1197_v11, %v1195_v29 }
 0x6b1   :  { %v1203_v14 = vadd.f32 %v1201_v30, %v1199_v31 }
 0x6b4   :  { %v1295_v33 = vpop.f32.mrb[6].mxu0 }
 0x6b5   :  { %v1299_v34 = vadd.f32 %v1295_v33, %v1203_v14  ;;  %v1771_v35 = vpop.f32.mrb[7].mxu0 }
 0x6b7   :  { %1978 = vtanh.f32 %v1299_v34  ;;  %v1533_v17 = vmul.f32 -1.442695, %v1299_v34 }
 0x6b9   :  { %1980 = vpow2.f32 %v1533_v17 }
 0x6c1   :  { %v1979_v36 = vpop.eup %1978 }
 0x6c2   :  { %1318 = vrot.lane.b32.xlu1 %v1979_v36, %s2187_s5 }
 0x6c3   :  { %v1981_v37 = vpop.eup %1980 }
 0x6c4   :  { %v1303_v38 = vadd.f32 1.0, %v1981_v37 }
 0x6c6   :  { %1313 = vrot.lane.b32.xlu1 %v1534_v55, %s2188_s9  ;;  %1982 = vrcp.f32 %v1303_v38 }
 0x6d0   :  { %v1983_v39 = vpop.eup %1982 }
 0x734   :  { %v1319_v20 = vpop.permute.xlu1 %1318 }
 0x735   :  { %v1321_v40 = vmul.f32 %v1983_v39, %v1319_v20 }
 0x737   :  { %1323 = vrot.lane.b32.xlu1 %v1321_v40, %s2188_s9 }
 0x738   :  { %v1314_v41 = vpop.permute.xlu1 %1313 }
 0x739   :  { %v1316_v23 = vmul.f32 %v1983_v39, %v1314_v41 }
 0x7a9   :  { %v1324_v42 = vpop.permute.xlu1 %1323 }
 0x7aa   :  { %v1326_v43 = vadd.f32 %v1324_v42, %v1316_v23 }
 0x7ac   :  { %1984 = vtanh.f32 %v1326_v43 }
 0x7b6   :  { %v1985_v50 = vpop.eup %1984 }
 0x7b7   :  { %1329 = vrot.lane.b32.xlu1 %v1985_v50, %s2187_s5 }
 0x829   :  { %v1330_v52 = vpop.permute.xlu1 %1329 }
 0x82a   :  { %v1332_v53 = vmul.f32 %v1983_v39, %v1330_v52 }
 0x82c   :  { %1339 = vrot.lane.b32.xlu1 %v1332_v53, %s2188_s9 }
 0x89e   :  { %v1340_v56 = vpop.permute.xlu1 %1339 }
 0x89f   :  { %1424 = vst.msk [vmem:[#allocation13] sm:$0x1] %vm1423_vm15, %v1340_v56  ;;  %1781 = vmatmul.mubr.msk.f32.vlgmr.msra.gmra.mrb[8].mxu0 %vm1341_vm0, %v1340_v56 }
 0x972   :  { %v1410_v59 = vpop.f32.mrb[8].mxu0 }
 0x973   :  { %v1411_v46 = vadd.f32 %v1410_v59, %v1337_v57  ;;  %v1782_v60 = vpop.f32.mrb[9].mxu0 }
 0x975   :  { %1417 = vrot.lane.b32.xlu1 %v1411_v46, %s2190_s4  ;;  %1415 = vst.msk [vmem:[#allocation10] sm:$0x1] %vm1414_vm1, %v1411_v46 }
 0x976   :  { %2085 = shalt.err (!%p2082_p8)
}
 0x977   :  { %s2086_s30 = scalar_lea.hbm %s2670_s12, 16 }
 0x978   :  { %p2087_p9 = scmp.ne.s32.totalorder %s2670_s12, %s2086_s30  ;;  %p2090_p10 = scmp.lt.u32.totalorder %s2086_s30, %s2670_s12 }
 0x97a   :  { %p2092_p11 = pnand %p2090_p10, %p2087_p9 }
 0x97c   :  { %2095 = shalt.err (!%p2092_p11)
}
 0x97d   :  { %1439 = dma.vmem_to_hbm [thread:$0]  %s1437_s3, 16, %s2670_s12, [#allocation4]   ;;  %vm1420_vm2 = vcmask 0  }
 0x97e   :  { %s2191_s16 = smov 96   ;;  %s2192_s5 = smov [#allocation11]  }
 0x97f   :  { %1426 = vrot.lane.b32.xlu1 %v1326_v43, %s2191_s16  ;;  %s1446_s9 = sshll.u32 %s2192_s5, 4  ;;  %s2193_s25 = smov [#allocation13]   ;;  %s1447_s9 = int_to_ptr.vmem [resolvable:$true] %s1446_s9 }
 0x980   :  { %s1456_s26 = sshll.u32 %s2193_s25, 4  ;;  %s2194_s27 = smov [#allocation14]   ;;  %s2605_s26 = int_to_ptr.vmem [resolvable:$true] %s1456_s26 }
 0x981   :  { %s1466_s1 = sshll.u32 %s2194_s27, 4  ;;  %s2096_s2 = scalar_lea.vmem %s1447_s9, 16  ;;  %s2607_s1 = int_to_ptr.vmem [resolvable:$true] %s1466_s1 }
 0x982   :  { %p2097_p12 = scmp.ne.s32.totalorder %s1447_s9, %s2096_s2  ;;  %s2100_s8 = scalar_lea.vmem %s1447_s9, 32 }
 0x983   :  { %p2101_p13 = scmp.lt.s32.totalorder %s1447_s9, %s1447_s9  ;;  %p2102_p0 = scmp.lt.s32.totalorder %s2100_s8, %s2096_s2 }
 0x985   :  { %p2103_p1 = por %p2102_p0, %p2101_p13 }
 0x987   :  { %p2104_p2 = pnand %p2103_p1, %p2097_p12 }
 0x9e7   :  { %v1418_v32 = vpop.permute.xlu1 %1417 }
 0x9e8   :  { %1421 = vst.msk [vmem:[#allocation11] sm:$0x1] %vm1420_vm2, %v1418_v32 }
 0x9e9   :  { %2107 = shalt.err (!%p2104_p2)
}
 0x9ea   :  { %s2108_s21 = scalar_lea.hbm %s2671_s13, 16 }
 0x9eb   :  { %p2109_p3 = scmp.ne.s32.totalorder %s2671_s13, %s2108_s21  ;;  %p2112_p4 = scmp.lt.u32.totalorder %s2108_s21, %s2671_s13 }
 0x9ed   :  { %p2114_p5 = pnand %p2112_p4, %p2109_p3 }
 0x9ef   :  { %2117 = shalt.err (!%p2114_p5)
}
 0x9f0   :  { %1449 = dma.vmem_to_hbm [thread:$0]  %s1447_s9, 16, %s2671_s13, [#allocation12]  }
 0x9f1   :  { %s2118_s28 = scalar_lea.vmem %s2605_s26, 16  ;;  %s2122_s29 = scalar_lea.vmem %s2605_s26, 32 }
 0x9f2   :  { %p2119_p6 = scmp.ne.s32.totalorder %s2605_s26, %s2118_s28  ;;  %p2123_p7 = scmp.lt.s32.totalorder %s2605_s26, %s2605_s26 }
 0x9f3   :  { %p2124_p8 = scmp.lt.s32.totalorder %s2122_s29, %s2118_s28 }
 0x9f5   :  { %p2125_p9 = por %p2124_p8, %p2123_p7 }
 0x9f7   :  { %p2126_p10 = pnand %p2125_p9, %p2119_p6 }
 0x9f9   :  { %2129 = shalt.err (!%p2126_p10)
}
 0x9fa   :  { %s2130_s17 = scalar_lea.hbm %s2672_s14, 16 }
 0x9fb   :  { %p2131_p11 = scmp.ne.s32.totalorder %s2672_s14, %s2130_s17  ;;  %p2134_p12 = scmp.lt.u32.totalorder %s2130_s17, %s2672_s14 }
 0x9fd   :  { %p2136_p13 = pnand %p2134_p12, %p2131_p11 }
 0x9ff   :  { %2139 = shalt.err (!%p2136_p13)
}
 0xa00   :  { %1459 = dma.vmem_to_hbm [thread:$0]  %s2605_s26, 16, %s2672_s14, [#allocation12]   ;;  %v1427_v62 = vpop.permute.xlu1 %1426 }
 0xa01   :  { %1429 = vst.msk [vmem:[#allocation14] sm:$0x1] %vm1423_vm15, %v1427_v62  ;;  %s2140_s16 = scalar_lea.vmem %s2607_s1, 16  ;;  %s2144_s5 = scalar_lea.vmem %s2607_s1, 32 }
 0xa02   :  { %p2141_p0 = scmp.ne.s32.totalorder %s2607_s1, %s2140_s16  ;;  %p2145_p1 = scmp.lt.s32.totalorder %s2607_s1, %s2607_s1 }
 0xa03   :  { %p2146_p2 = scmp.lt.s32.totalorder %s2144_s5, %s2140_s16 }
 0xa05   :  { %p2147_p3 = por %p2146_p2, %p2145_p1 }
 0xa07   :  { %p2148_p4 = pnand %p2147_p3, %p2141_p0 }
 0xa09   :  { %2151 = shalt.err (!%p2148_p4)
}
 0xa0a   :  { %s2152_s27 = scalar_lea.hbm %s2673_s15, 16 }
 0xa0b   :  { %p2153_p5 = scmp.ne.s32.totalorder %s2673_s15, %s2152_s27  ;;  %p2156_p6 = scmp.lt.u32.totalorder %s2152_s27, %s2673_s15 }
 0xa0d   :  { %p2158_p7 = pnand %p2156_p6, %p2153_p5 }
 0xa0f   :  { %2161 = shalt.err (!%p2158_p7)
}
 0xa10   :  { %1469 = dma.vmem_to_hbm [thread:$0]  %s2607_s1, 16, %s2673_s15, [#allocation15]  }
 0xa11   :  { %2168 = dma.done.wait [#allocation4], 16  }
 0xa12   :  { %2169 = vsyncadd [#allocation4], 4294967280 }
 0xa13   :  { %2170 = dma.done.wait [#allocation12], 32  }
 0xa14   :  { %2171 = vsyncadd [#allocation12], 4294967264 }
 0xa15   :  { %2172 = dma.done.wait [#allocation15], 16  }
 0xa16   :  { %2173 = vsyncadd [#allocation15], 4294967280 }
 0xa17   :  { %1482 = vsyncpa [#allocation3], 1 }
 0xa18   :  { %1483 = vsyncpa [#allocation6], 1 }
 0xa19   :  { %1484 = vsyncpa [#allocation9], 1 }
 0xa1a   :  { %1485 = vsyncpa [#allocation4], 1 }
 0xa1b   :  { %1486 = vsyncpa [#allocation12], 1 }
 0xa1c   :  { %1487 = vsyncpa [#allocation15], 1 }

</bundles_post_ra>
